<compile_context>
chip_gen: v7x
topology: tpu7x:2x2x1
jax: 0.10.0
libtpu: 0.0.40
codegen_flags: <defaults>
</compile_context>

<pallas_src>
import functools

import jax
import jax.numpy as jnp
from jax import lax
from jax.experimental import pallas as pl
from jax.experimental.pallas import tpu as pltpu


def gru_encoder_kernel(ids_ref, lens_ref, emb_ref,
                       wih_r_ref, wih_z_ref, wih_n_ref,
                       whh_r_ref, whh_z_ref, whh_n_ref,
                       b_r_ref, b_z_ref, b_in_ref, b_hn_ref,
                       out_ref, hid_ref,
                       pre_r_ref, pre_z_ref, pre_n_ref, h_ref):
    """One (batch-chunk, seq-chunk) grid step of the GRU encoder.

    ids_ref : (Sc, Bc, 1) int32  token ids, time-major
    lens_ref: (Bc, 1)     int32  unpadded sequence lengths
    emb_ref : (V, E)             embedding table
    wih_*   : (E, H)             per-gate input weights  (gate order r, z, n)
    whh_*   : (H, H)             per-gate hidden weights
    b_r,b_z : (1, H)             combined biases (b_ih + b_hh) for the r / z gates
    b_in    : (1, H)             input-side bias of the n gate
    b_hn    : (1, H)             hidden-side bias of the n gate (inside the r*(.) term)
    out_ref : (Sc, Bc, H)        per-step hidden states (zeroed past each length)
    hid_ref : (Bc, H)            final hidden state (pack_padded semantics)
    pre_*   : (Sc, Bc, H) VMEM scratch with the hoisted input projections
    h_ref   : (Bc, H)     VMEM scratch carrying h across seq chunks
    """
    s_idx = pl.program_id(1)
    Sc, Bc, H = out_ref.shape
    V = emb_ref.shape[0]

    @pl.when(s_idx == 0)
    def _():
        h_ref[...] = jnp.zeros_like(h_ref)

    # ---- Hoisted input projection: embedding gather (one-hot GEMM) + three per-gate
    #      x @ W_ih GEMMs, done ONCE per chunk outside the serial recurrence.
    onehot = (ids_ref[...] ==
              lax.broadcasted_iota(jnp.int32, (Sc, Bc, V), 2)).astype(jnp.float32)
    onehot2 = onehot.reshape(Sc * Bc, V)
    xe = jnp.dot(onehot2, emb_ref[...], preferred_element_type=jnp.float32)   # (Sc*Bc, E)
    pre_r_ref[...] = (jnp.dot(xe, wih_r_ref[...], preferred_element_type=jnp.float32)
                      + b_r_ref[...]).reshape(Sc, Bc, H)
    pre_z_ref[...] = (jnp.dot(xe, wih_z_ref[...], preferred_element_type=jnp.float32)
                      + b_z_ref[...]).reshape(Sc, Bc, H)
    pre_n_ref[...] = (jnp.dot(xe, wih_n_ref[...], preferred_element_type=jnp.float32)
                      + b_in_ref[...]).reshape(Sc, Bc, H)

    # ---- Loop-invariant hoists (weights, bias / length broadcasts).
    whh_r = whh_r_ref[...]
    whh_z = whh_z_ref[...]
    whh_n = whh_n_ref[...]
    b_hn = jnp.broadcast_to(b_hn_ref[...], (Bc, H))
    lens_b = jnp.broadcast_to(lens_ref[...], (Bc, H))          # int32
    t0 = s_idx * Sc

    def step(t, carry):
        h_prev = h_ref[...]                                    # (Bc, H)
        gh_r = jnp.dot(h_prev, whh_r, preferred_element_type=jnp.float32)
        gh_z = jnp.dot(h_prev, whh_z, preferred_element_type=jnp.float32)
        gh_n = jnp.dot(h_prev, whh_n, preferred_element_type=jnp.float32) + b_hn
        r = jax.nn.sigmoid(pre_r_ref[t] + gh_r)
        z = jax.nn.sigmoid(pre_z_ref[t] + gh_z)
        n = jnp.tanh(pre_n_ref[t] + r * gh_n)
        h_new = (1.0 - z) * n + z * h_prev
        # packed-sequence semantics: output is zero past the length, hidden stops updating.
        mask = lens_b > (t0 + t)                               # (Bc, H) bool
        out_ref[t] = jnp.where(mask, h_new, 0.0).astype(out_ref.dtype)
        h_ref[...] = jnp.where(mask, h_new, h_prev)
        return carry

    lax.fori_loop(0, Sc, step, 0, unroll=True)
    hid_ref[...] = h_ref[...].astype(hid_ref.dtype)


def init_encoder_params(input_dim, embed_dim, hidden_dim, key):
    """PyTorch-layout synthetic parameters (gate order r, z, n; uniform(-1/sqrt(H), 1/sqrt(H)))."""
    k_emb, k_wih, k_whh, k_bih, k_bhh = jax.random.split(key, 5)
    bound = 1.0 / jnp.sqrt(jnp.float32(hidden_dim))
    return {
        "embedding": jax.random.normal(k_emb, (input_dim, embed_dim), jnp.float32),
        "w_ih": jax.random.uniform(k_wih, (3 * hidden_dim, embed_dim), jnp.float32,
                                   -bound, bound),
        "w_hh": jax.random.uniform(k_whh, (3 * hidden_dim, hidden_dim), jnp.float32,
                                   -bound, bound),
        "b_ih": jax.random.uniform(k_bih, (3 * hidden_dim,), jnp.float32, -bound, bound),
        "b_hh": jax.random.uniform(k_bhh, (3 * hidden_dim,), jnp.float32, -bound, bound),
    }


def _ceil_to(x, m):
    return ((x + m - 1) // m) * m


@functools.partial(jax.jit, static_argnames=("max_len", "s_chunk", "b_chunk"))
def encoder_forward(x, x_sz, params, max_len, s_chunk=None, b_chunk=None):
    """Mirrors Encoder.forward: returns (output (B, max_len, H), hidden (1, B, H)).

    `max_len` is the static maximum unpadded length (pad_packed_sequence truncation);
    taking it statically avoids a device->host sync and keeps the wrapper jittable.
    """
    emb = params["embedding"]             # (V, E)
    w_ih = params["w_ih"]                 # (3H, E)  PyTorch layout, gates r,z,n
    w_hh = params["w_hh"]                 # (3H, H)
    b_ih = params["b_ih"]                 # (3H,)
    b_hh = params["b_hh"]                 # (3H,)

    B, S = x.shape
    V, E = emb.shape
    H = w_hh.shape[1]

    # Pad batch to a sublane multiple and the sequence to a chunk multiple.
    Bp = max(8, _ceil_to(B, 8))
    b_chunk = Bp if b_chunk is None else b_chunk
    s_chunk = S if s_chunk is None else s_chunk
    Sp = _ceil_to(S, s_chunk)
    assert Bp % b_chunk == 0 and b_chunk % 8 == 0 and Sp % s_chunk == 0

    ids = jnp.transpose(x.astype(jnp.int32), (1, 0))                     # (S, B)
    ids = jnp.pad(ids, ((0, Sp - S), (0, Bp - B)))[:, :, None]           # (Sp, Bp, 1)
    lens = jnp.pad(x_sz.astype(jnp.int32).reshape(-1),
                   ((0, Bp - B),))[:, None]                              # (Bp, 1)

    # Split into per-gate weights / biases (PyTorch gate order r, z, n).
    w_ih_r, w_ih_z, w_ih_n = (w_ih[i * H:(i + 1) * H].T for i in range(3))   # (E, H)
    w_hh_r, w_hh_z, w_hh_n = (w_hh[i * H:(i + 1) * H].T for i in range(3))   # (H, H)
    b_r = (b_ih[0:H] + b_hh[0:H])[None, :]
    b_z = (b_ih[H:2 * H] + b_hh[H:2 * H])[None, :]
    b_in = b_ih[2 * H:3 * H][None, :]
    b_hn = b_hh[2 * H:3 * H][None, :]

    nb, ns = Bp // b_chunk, Sp // s_chunk
    const = lambda b, s: (0, 0)

    out_tm, hid = pl.pallas_call(
        gru_encoder_kernel,
        grid=(nb, ns),
        in_specs=[
            pl.BlockSpec((s_chunk, b_chunk, 1), lambda b, s: (s, b, 0)),     # ids
            pl.BlockSpec((b_chunk, 1), lambda b, s: (b, 0)),                 # lengths
            pl.BlockSpec((V, E), const),                                     # embedding
            pl.BlockSpec((E, H), const), pl.BlockSpec((E, H), const),
            pl.BlockSpec((E, H), const),                                     # W_ih r,z,n
            pl.BlockSpec((H, H), const), pl.BlockSpec((H, H), const),
            pl.BlockSpec((H, H), const),                                     # W_hh r,z,n
            pl.BlockSpec((1, H), const), pl.BlockSpec((1, H), const),
            pl.BlockSpec((1, H), const), pl.BlockSpec((1, H), const),        # biases
        ],
        out_specs=(
            pl.BlockSpec((s_chunk, b_chunk, H), lambda b, s: (s, b, 0)),     # outputs
            pl.BlockSpec((b_chunk, H), lambda b, s: (b, 0)),                 # final hidden
        ),
        out_shape=(jax.ShapeDtypeStruct((Sp, Bp, H), jnp.float32),
                   jax.ShapeDtypeStruct((Bp, H), jnp.float32)),
        scratch_shapes=[pltpu.VMEM((s_chunk, b_chunk, H), jnp.float32)] * 3
                       + [pltpu.VMEM((b_chunk, H), jnp.float32)],
        compiler_params=pltpu.CompilerParams(
            dimension_semantics=("parallel", "arbitrary")),
    )(ids, lens, emb, w_ih_r, w_ih_z, w_ih_n, w_hh_r, w_hh_z, w_hh_n,
      b_r, b_z, b_in, b_hn)

    # pad_packed_sequence truncation + back to (batch, time, hidden).
    output = jnp.transpose(out_tm[:max_len, :B, :], (1, 0, 2))
    hidden = hid[:B][None, :, :]
    return output, hidden


def _reference_forward(x, x_sz, params, max_len):
    """Pure-JAX reference (lax.scan GRU, PyTorch weight layout) for correctness checking."""
    emb = jnp.take(params["embedding"], x, axis=0)     # (B, S, E)
    B, S, E = emb.shape
    w_ih, w_hh = params["w_ih"], params["w_hh"]        # (3H, E), (3H, H)
    b_ih, b_hh = params["b_ih"], params["b_hh"]
    H = w_hh.shape[1]
    lens = x_sz.astype(jnp.int32).reshape(-1)

    def step(h, inp):
        x_t, m = inp                                   # (B, E), (B, 1)
        gi = x_t @ w_ih.T + b_ih
        gh = h @ w_hh.T + b_hh
        r = jax.nn.sigmoid(gi[:, :H] + gh[:, :H])
        z = jax.nn.sigmoid(gi[:, H:2 * H] + gh[:, H:2 * H])
        n = jnp.tanh(gi[:, 2 * H:] + r * gh[:, 2 * H:])
        h_new = (1 - z) * n + z * h
        return m * h_new + (1 - m) * h, m * h_new

    xs = jnp.transpose(emb, (1, 0, 2))                                   # (S, B, E)
    ms = (jnp.arange(S)[:, None] < lens[None, :]).astype(jnp.float32)[:, :, None]
    h_last, outs = lax.scan(step, jnp.zeros((B, H), jnp.float32), (xs, ms))
    return jnp.transpose(outs[:max_len], (1, 0, 2)), h_last[None, :, :]


if __name__ == "__main__":
    # Encoder(input_dim=16, embed_dim=32, hidden_dim=32, rnn_type='gru', layers=1)
    INPUT_DIM, EMBED_DIM, HIDDEN_DIM = 16, 32, 32
    BATCH, SEQ = 2, 8

    key = jax.random.PRNGKey(0)
    k_params, k_x = jax.random.split(key)
    params = init_encoder_params(INPUT_DIM, EMBED_DIM, HIDDEN_DIM, k_params)

    x = jax.random.randint(k_x, (BATCH, SEQ), 0, INPUT_DIM, dtype=jnp.int32)
    lengths = [SEQ, 5]                       # unpadded lengths (like pack_padded)
    x_sz = jnp.array(lengths, dtype=jnp.int32)
    max_len = max(lengths)                   # static -> no device->host sync in the wrapper

    output, hidden = encoder_forward(x, x_sz, params, max_len=max_len,
                                     s_chunk=4, b_chunk=8)   # 2 seq chunks exercise the grid
    jax.block_until_ready((output, hidden))

    ref_out, ref_hid = _reference_forward(x, x_sz, params, max_len)
    assert output.shape == (BATCH, max_len, HIDDEN_DIM)
    assert hidden.shape == (1, BATCH, HIDDEN_DIM)
    assert jnp.allclose(output, ref_out, atol=1e-5, rtol=1e-5)
    assert jnp.allclose(hidden, ref_hid, atol=1e-5, rtol=1e-5)

    print("KERNEL_OK")
</pallas_src>

<mosaic_0001>
module attributes {stable_mosaic.version = 11 : i64} {
  func.func @gru_encoder_kernel(%arg0: i32, %arg1: i32, %arg2: memref<4x8x1xi32, #tpu.memory_space<vmem>>, %arg3: memref<8x1xi32, #tpu.memory_space<vmem>>, %arg4: memref<16x32xf32, #tpu.memory_space<vmem>>, %arg5: memref<32x32xf32, #tpu.memory_space<vmem>>, %arg6: memref<32x32xf32, #tpu.memory_space<vmem>>, %arg7: memref<32x32xf32, #tpu.memory_space<vmem>>, %arg8: memref<32x32xf32, #tpu.memory_space<vmem>>, %arg9: memref<32x32xf32, #tpu.memory_space<vmem>>, %arg10: memref<32x32xf32, #tpu.memory_space<vmem>>, %arg11: memref<1x32xf32, #tpu.memory_space<vmem>>, %arg12: memref<1x32xf32, #tpu.memory_space<vmem>>, %arg13: memref<1x32xf32, #tpu.memory_space<vmem>>, %arg14: memref<1x32xf32, #tpu.memory_space<vmem>>, %arg15: memref<4x8x32xf32, #tpu.memory_space<vmem>>, %arg16: memref<8x32xf32, #tpu.memory_space<vmem>>, %arg17: memref<4x8x32xf32, #tpu.memory_space<vmem>>, %arg18: memref<4x8x32xf32, #tpu.memory_space<vmem>>, %arg19: memref<4x8x32xf32, #tpu.memory_space<vmem>>, %arg20: memref<8x32xf32, #tpu.memory_space<vmem>>) attributes {dimension_semantics = [#tpu.dimension_semantics<parallel>, #tpu.dimension_semantics<arbitrary>], iteration_bounds = array<i64: 1, 2>, scalar_prefetch = 0 : i64, scratch_operands = 4 : i64, tpu.core_type = #tpu.core_type<tc>, window_params = [{transform_indices = @transform_0, window_bounds = array<i64: 4, 8, 1>}, {transform_indices = @transform_1, window_bounds = array<i64: 8, 1>}, {pipeline_mode = #tpu.pipeline_mode<synchronous>, transform_indices = @transform_2, window_bounds = array<i64: 16, 32>}, {pipeline_mode = #tpu.pipeline_mode<synchronous>, transform_indices = @transform_3, window_bounds = array<i64: 32, 32>}, {pipeline_mode = #tpu.pipeline_mode<synchronous>, transform_indices = @transform_4, window_bounds = array<i64: 32, 32>}, {pipeline_mode = #tpu.pipeline_mode<synchronous>, transform_indices = @transform_5, window_bounds = array<i64: 32, 32>}, {pipeline_mode = #tpu.pipeline_mode<synchronous>, transform_indices = @transform_6, window_bounds = array<i64: 32, 32>}, {pipeline_mode = #tpu.pipeline_mode<synchronous>, transform_indices = @transform_7, window_bounds = array<i64: 32, 32>}, {pipeline_mode = #tpu.pipeline_mode<synchronous>, transform_indices = @transform_8, window_bounds = array<i64: 32, 32>}, {pipeline_mode = #tpu.pipeline_mode<synchronous>, transform_indices = @transform_9, window_bounds = array<i64: 1, 32>}, {pipeline_mode = #tpu.pipeline_mode<synchronous>, transform_indices = @transform_10, window_bounds = array<i64: 1, 32>}, {pipeline_mode = #tpu.pipeline_mode<synchronous>, transform_indices = @transform_11, window_bounds = array<i64: 1, 32>}, {pipeline_mode = #tpu.pipeline_mode<synchronous>, transform_indices = @transform_12, window_bounds = array<i64: 1, 32>}, {transform_indices = @transform_13, window_bounds = array<i64: 4, 8, 32>}, {transform_indices = @transform_14, window_bounds = array<i64: 8, 32>}]} {
    %c0_i32 = arith.constant 0 : i32
    %0 = arith.cmpi eq, %arg1, %c0_i32 : i32
    %1 = arith.extui %0 : i1 to i32
    %c0_i32_0 = arith.constant 0 : i32
    %2 = arith.cmpi ne, %1, %c0_i32_0 : i32
    scf.if %2 {
      %cst_121 = arith.constant 0.000000e+00 : f32
      %225 = vector.broadcast %cst_121 : f32 to vector<8x32xf32>
      %c0_122 = arith.constant 0 : index
      %c0_123 = arith.constant 0 : index
      %226 = vector.load %arg20[%c0_122, %c0_123] : memref<8x32xf32, #tpu.memory_space<vmem>>, vector<8x32xf32>
      tpu.vector_store %arg20[%c0_122, %c0_123], %225 {strides = array<i32>} : memref<8x32xf32, #tpu.memory_space<vmem>>, vector<8x32xf32>,
    } else {
    }
    %c0 = arith.constant 0 : index
    %c0_1 = arith.constant 0 : index
    %c0_2 = arith.constant 0 : index
    %3 = vector.load %arg2[%c0, %c0_1, %c0_2] : memref<4x8x1xi32, #tpu.memory_space<vmem>>, vector<4x8x1xi32>
    %4 = tpu.iota {dimensions = array<i32: 2>} : vector<4x8x16xi32>
    %5 = vector.broadcast %3 : vector<4x8x1xi32> to vector<4x8x16xi32>
    %6 = arith.cmpi eq, %5, %4 : vector<4x8x16xi32>
    %7 = arith.extui %6 : vector<4x8x16xi1> to vector<4x8x16xi32>
    %8 = arith.sitofp %7 : vector<4x8x16xi32> to vector<4x8x16xf32>
    %9 = vector.shape_cast %8 : vector<4x8x16xf32> to vector<32x16xf32>
    %c0_3 = arith.constant 0 : index
    %c0_4 = arith.constant 0 : index
    %10 = vector.load %arg4[%c0_3, %c0_4] : memref<16x32xf32, #tpu.memory_space<vmem>>, vector<16x32xf32>
    %cst = arith.constant dense<0.000000e+00> : vector<32x32xf32>
    %11 = tpu.matmul %9, %10, %cst {dimension_numbers = #tpu.dot_dimension_numbers<[1], [0], [0], [1], [0, 0, 1, 1], [], []>} : vector<32x16xf32>, vector<16x32xf32>, vector<32x32xf32> -> vector<32x32xf32>
    %c0_5 = arith.constant 0 : index
    %c0_6 = arith.constant 0 : index
    %12 = vector.load %arg5[%c0_5, %c0_6] : memref<32x32xf32, #tpu.memory_space<vmem>>, vector<32x32xf32>
    %cst_7 = arith.constant dense<0.000000e+00> : vector<32x32xf32>
    %13 = tpu.matmul %11, %12, %cst_7 {dimension_numbers = #tpu.dot_dimension_numbers<[1], [0], [0], [1], [0, 0, 1, 1], [], []>} : vector<32x32xf32>, vector<32x32xf32>, vector<32x32xf32> -> vector<32x32xf32>
    %c0_8 = arith.constant 0 : index
    %c0_9 = arith.constant 0 : index
    %14 = vector.load %arg11[%c0_8, %c0_9] : memref<1x32xf32, #tpu.memory_space<vmem>>, vector<1x32xf32>
    %15 = vector.broadcast %14 : vector<1x32xf32> to vector<32x32xf32>
    %16 = arith.addf %13, %15 : vector<32x32xf32>
    %17 = vector.shape_cast %16 : vector<32x32xf32> to vector<4x8x32xf32>
    %c0_10 = arith.constant 0 : index
    %c0_11 = arith.constant 0 : index
    %c0_12 = arith.constant 0 : index
    %18 = vector.load %arg17[%c0_10, %c0_11, %c0_12] : memref<4x8x32xf32, #tpu.memory_space<vmem>>, vector<4x8x32xf32>
    tpu.vector_store %arg17[%c0_10, %c0_11, %c0_12], %17 {strides = array<i32>} : memref<4x8x32xf32, #tpu.memory_space<vmem>>, vector<4x8x32xf32>,
    %c0_13 = arith.constant 0 : index
    %c0_14 = arith.constant 0 : index
    %19 = vector.load %arg6[%c0_13, %c0_14] : memref<32x32xf32, #tpu.memory_space<vmem>>, vector<32x32xf32>
    %cst_15 = arith.constant dense<0.000000e+00> : vector<32x32xf32>
    %20 = tpu.matmul %11, %19, %cst_15 {dimension_numbers = #tpu.dot_dimension_numbers<[1], [0], [0], [1], [0, 0, 1, 1], [], []>} : vector<32x32xf32>, vector<32x32xf32>, vector<32x32xf32> -> vector<32x32xf32>
    %c0_16 = arith.constant 0 : index
    %c0_17 = arith.constant 0 : index
    %21 = vector.load %arg12[%c0_16, %c0_17] : memref<1x32xf32, #tpu.memory_space<vmem>>, vector<1x32xf32>
    %22 = vector.broadcast %21 : vector<1x32xf32> to vector<32x32xf32>
    %23 = arith.addf %20, %22 : vector<32x32xf32>
    %24 = vector.shape_cast %23 : vector<32x32xf32> to vector<4x8x32xf32>
    %c0_18 = arith.constant 0 : index
    %c0_19 = arith.constant 0 : index
    %c0_20 = arith.constant 0 : index
    %25 = vector.load %arg18[%c0_18, %c0_19, %c0_20] : memref<4x8x32xf32, #tpu.memory_space<vmem>>, vector<4x8x32xf32>
    tpu.vector_store %arg18[%c0_18, %c0_19, %c0_20], %24 {strides = array<i32>} : memref<4x8x32xf32, #tpu.memory_space<vmem>>, vector<4x8x32xf32>,
    %c0_21 = arith.constant 0 : index
    %c0_22 = arith.constant 0 : index
    %26 = vector.load %arg7[%c0_21, %c0_22] : memref<32x32xf32, #tpu.memory_space<vmem>>, vector<32x32xf32>
    %cst_23 = arith.constant dense<0.000000e+00> : vector<32x32xf32>
    %27 = tpu.matmul %11, %26, %cst_23 {dimension_numbers = #tpu.dot_dimension_numbers<[1], [0], [0], [1], [0, 0, 1, 1], [], []>} : vector<32x32xf32>, vector<32x32xf32>, vector<32x32xf32> -> vector<32x32xf32>
    %c0_24 = arith.constant 0 : index
    %c0_25 = arith.constant 0 : index
    %28 = vector.load %arg13[%c0_24, %c0_25] : memref<1x32xf32, #tpu.memory_space<vmem>>, vector<1x32xf32>
    %29 = vector.broadcast %28 : vector<1x32xf32> to vector<32x32xf32>
    %30 = arith.addf %27, %29 : vector<32x32xf32>
    %31 = vector.shape_cast %30 : vector<32x32xf32> to vector<4x8x32xf32>
    %c0_26 = arith.constant 0 : index
    %c0_27 = arith.constant 0 : index
    %c0_28 = arith.constant 0 : index
    %32 = vector.load %arg19[%c0_26, %c0_27, %c0_28] : memref<4x8x32xf32, #tpu.memory_space<vmem>>, vector<4x8x32xf32>
    tpu.vector_store %arg19[%c0_26, %c0_27, %c0_28], %31 {strides = array<i32>} : memref<4x8x32xf32, #tpu.memory_space<vmem>>, vector<4x8x32xf32>,
    %c0_29 = arith.constant 0 : index
    %c0_30 = arith.constant 0 : index
    %33 = vector.load %arg8[%c0_29, %c0_30] : memref<32x32xf32, #tpu.memory_space<vmem>>, vector<32x32xf32>
    %c0_31 = arith.constant 0 : index
    %c0_32 = arith.constant 0 : index
    %34 = vector.load %arg9[%c0_31, %c0_32] : memref<32x32xf32, #tpu.memory_space<vmem>>, vector<32x32xf32>
    %c0_33 = arith.constant 0 : index
    %c0_34 = arith.constant 0 : index
    %35 = vector.load %arg10[%c0_33, %c0_34] : memref<32x32xf32, #tpu.memory_space<vmem>>, vector<32x32xf32>
    %c0_35 = arith.constant 0 : index
    %c0_36 = arith.constant 0 : index
    %36 = vector.load %arg14[%c0_35, %c0_36] : memref<1x32xf32, #tpu.memory_space<vmem>>, vector<1x32xf32>
    %37 = vector.shape_cast %36 : vector<1x32xf32> to vector<1x32xf32>
    %38 = vector.broadcast %37 : vector<1x32xf32> to vector<8x32xf32>
    %c0_37 = arith.constant 0 : index
    %c0_38 = arith.constant 0 : index
    %39 = vector.load %arg3[%c0_37, %c0_38] : memref<8x1xi32, #tpu.memory_space<vmem>>, vector<8x1xi32>
    %40 = vector.shape_cast %39 : vector<8x1xi32> to vector<8x1xi32>
    %41 = vector.broadcast %40 : vector<8x1xi32> to vector<8x32xi32>
    %c4_i32 = arith.constant 4 : i32
    %42 = arith.muli %arg1, %c4_i32 : i32
    %c0_i32_39 = arith.constant 0 : i32
    %c0_40 = arith.constant 0 : index
    %c0_41 = arith.constant 0 : index
    %43 = vector.load %arg20[%c0_40, %c0_41] : memref<8x32xf32, #tpu.memory_space<vmem>>, vector<8x32xf32>
    %cst_42 = arith.constant dense<0.000000e+00> : vector<8x32xf32>
    %44 = tpu.matmul %43, %33, %cst_42 {dimension_numbers = #tpu.dot_dimension_numbers<[1], [0], [0], [1], [0, 0, 1, 1], [], []>} : vector<8x32xf32>, vector<32x32xf32>, vector<8x32xf32> -> vector<8x32xf32>
    %cst_43 = arith.constant dense<0.000000e+00> : vector<8x32xf32>
    %45 = tpu.matmul %43, %34, %cst_43 {dimension_numbers = #tpu.dot_dimension_numbers<[1], [0], [0], [1], [0, 0, 1, 1], [], []>} : vector<8x32xf32>, vector<32x32xf32>, vector<8x32xf32> -> vector<8x32xf32>
    %cst_44 = arith.constant dense<0.000000e+00> : vector<8x32xf32>
    %46 = tpu.matmul %43, %35, %cst_44 {dimension_numbers = #tpu.dot_dimension_numbers<[1], [0], [0], [1], [0, 0, 1, 1], [], []>} : vector<8x32xf32>, vector<32x32xf32>, vector<8x32xf32> -> vector<8x32xf32>
    %47 = arith.addf %46, %38 : vector<8x32xf32>
    %48 = arith.index_cast %c0_i32_39 : i32 to index
    %c0_45 = arith.constant 0 : index
    %c0_46 = arith.constant 0 : index
    %49 = vector.load %arg17[%48, %c0_45, %c0_46] : memref<4x8x32xf32, #tpu.memory_space<vmem>>, vector<1x8x32xf32>
    %50 = vector.shape_cast %49 : vector<1x8x32xf32> to vector<8x32xf32>
    %51 = arith.addf %50, %44 : vector<8x32xf32>
    %52 = arith.negf %51 : vector<8x32xf32>
    %53 = math.exp %52 : vector<8x32xf32>
    %cst_47 = arith.constant 1.000000e+00 : f32
    %54 = vector.broadcast %cst_47 : f32 to vector<8x32xf32>
    %55 = arith.addf %54, %53 : vector<8x32xf32>
    %56 = arith.divf %54, %55 : vector<8x32xf32>
    %57 = arith.index_cast %c0_i32_39 : i32 to index
    %c0_48 = arith.constant 0 : index
    %c0_49 = arith.constant 0 : index
    %58 = vector.load %arg18[%57, %c0_48, %c0_49] : memref<4x8x32xf32, #tpu.memory_space<vmem>>, vector<1x8x32xf32>
    %59 = vector.shape_cast %58 : vector<1x8x32xf32> to vector<8x32xf32>
    %60 = arith.addf %59, %45 : vector<8x32xf32>
    %61 = arith.negf %60 : vector<8x32xf32>
    %62 = math.exp %61 : vector<8x32xf32>
    %cst_50 = arith.constant 1.000000e+00 : f32
    %63 = vector.broadcast %cst_50 : f32 to vector<8x32xf32>
    %64 = arith.addf %63, %62 : vector<8x32xf32>
    %65 = arith.divf %63, %64 : vector<8x32xf32>
    %66 = arith.index_cast %c0_i32_39 : i32 to index
    %c0_51 = arith.constant 0 : index
    %c0_52 = arith.constant 0 : index
    %67 = vector.load %arg19[%66, %c0_51, %c0_52] : memref<4x8x32xf32, #tpu.memory_space<vmem>>, vector<1x8x32xf32>
    %68 = vector.shape_cast %67 : vector<1x8x32xf32> to vector<8x32xf32>
    %69 = arith.mulf %56, %47 : vector<8x32xf32>
    %70 = arith.addf %68, %69 : vector<8x32xf32>
    %71 = math.tanh %70 : vector<8x32xf32>
    %cst_53 = arith.constant 1.000000e+00 : f32
    %72 = vector.broadcast %cst_53 : f32 to vector<8x32xf32>
    %73 = arith.subf %72, %65 : vector<8x32xf32>
    %74 = arith.mulf %73, %71 : vector<8x32xf32>
    %75 = arith.mulf %65, %43 : vector<8x32xf32>
    %76 = arith.addf %74, %75 : vector<8x32xf32>
    %77 = arith.addi %42, %c0_i32_39 : i32
    %78 = vector.broadcast %77 : i32 to vector<8x32xi32>
    %79 = arith.cmpi sgt, %41, %78 : vector<8x32xi32>
    %cst_54 = arith.constant 0.000000e+00 : f32
    %80 = vector.broadcast %cst_54 : f32 to vector<8x32xf32>
    %81 = arith.select %79, %76, %80 : vector<8x32xi1>, vector<8x32xf32>
    %82 = arith.index_cast %c0_i32_39 : i32 to index
    %c0_55 = arith.constant 0 : index
    %c0_56 = arith.constant 0 : index
    %83 = vector.load %arg15[%82, %c0_55, %c0_56] : memref<4x8x32xf32, #tpu.memory_space<vmem>>, vector<1x8x32xf32>
    %84 = vector.shape_cast %83 : vector<1x8x32xf32> to vector<8x32xf32>
    %85 = vector.shape_cast %81 : vector<8x32xf32> to vector<1x8x32xf32>
    tpu.vector_store %arg15[%82, %c0_55, %c0_56], %85 {strides = array<i32>} : memref<4x8x32xf32, #tpu.memory_space<vmem>>, vector<1x8x32xf32>,
    %86 = arith.select %79, %76, %43 : vector<8x32xi1>, vector<8x32xf32>
    %c0_57 = arith.constant 0 : index
    %c0_58 = arith.constant 0 : index
    %87 = vector.load %arg20[%c0_57, %c0_58] : memref<8x32xf32, #tpu.memory_space<vmem>>, vector<8x32xf32>
    tpu.vector_store %arg20[%c0_57, %c0_58], %86 {strides = array<i32>} : memref<8x32xf32, #tpu.memory_space<vmem>>, vector<8x32xf32>,
    %c1_i32 = arith.constant 1 : i32
    %c0_59 = arith.constant 0 : index
    %c0_60 = arith.constant 0 : index
    %88 = vector.load %arg20[%c0_59, %c0_60] : memref<8x32xf32, #tpu.memory_space<vmem>>, vector<8x32xf32>
    %cst_61 = arith.constant dense<0.000000e+00> : vector<8x32xf32>
    %89 = tpu.matmul %88, %33, %cst_61 {dimension_numbers = #tpu.dot_dimension_numbers<[1], [0], [0], [1], [0, 0, 1, 1], [], []>} : vector<8x32xf32>, vector<32x32xf32>, vector<8x32xf32> -> vector<8x32xf32>
    %cst_62 = arith.constant dense<0.000000e+00> : vector<8x32xf32>
    %90 = tpu.matmul %88, %34, %cst_62 {dimension_numbers = #tpu.dot_dimension_numbers<[1], [0], [0], [1], [0, 0, 1, 1], [], []>} : vector<8x32xf32>, vector<32x32xf32>, vector<8x32xf32> -> vector<8x32xf32>
    %cst_63 = arith.constant dense<0.000000e+00> : vector<8x32xf32>
    %91 = tpu.matmul %88, %35, %cst_63 {dimension_numbers = #tpu.dot_dimension_numbers<[1], [0], [0], [1], [0, 0, 1, 1], [], []>} : vector<8x32xf32>, vector<32x32xf32>, vector<8x32xf32> -> vector<8x32xf32>
    %92 = arith.addf %91, %38 : vector<8x32xf32>
    %93 = arith.index_cast %c1_i32 : i32 to index
    %c0_64 = arith.constant 0 : index
    %c0_65 = arith.constant 0 : index
    %94 = vector.load %arg17[%93, %c0_64, %c0_65] : memref<4x8x32xf32, #tpu.memory_space<vmem>>, vector<1x8x32xf32>
    %95 = vector.shape_cast %94 : vector<1x8x32xf32> to vector<8x32xf32>
    %96 = arith.addf %95, %89 : vector<8x32xf32>
    %97 = arith.negf %96 : vector<8x32xf32>
    %98 = math.exp %97 : vector<8x32xf32>
    %cst_66 = arith.constant 1.000000e+00 : f32
    %99 = vector.broadcast %cst_66 : f32 to vector<8x32xf32>
    %100 = arith.addf %99, %98 : vector<8x32xf32>
    %101 = arith.divf %99, %100 : vector<8x32xf32>
    %102 = arith.index_cast %c1_i32 : i32 to index
    %c0_67 = arith.constant 0 : index
    %c0_68 = arith.constant 0 : index
    %103 = vector.load %arg18[%102, %c0_67, %c0_68] : memref<4x8x32xf32, #tpu.memory_space<vmem>>, vector<1x8x32xf32>
    %104 = vector.shape_cast %103 : vector<1x8x32xf32> to vector<8x32xf32>
    %105 = arith.addf %104, %90 : vector<8x32xf32>
    %106 = arith.negf %105 : vector<8x32xf32>
    %107 = math.exp %106 : vector<8x32xf32>
    %cst_69 = arith.constant 1.000000e+00 : f32
    %108 = vector.broadcast %cst_69 : f32 to vector<8x32xf32>
    %109 = arith.addf %108, %107 : vector<8x32xf32>
    %110 = arith.divf %108, %109 : vector<8x32xf32>
    %111 = arith.index_cast %c1_i32 : i32 to index
    %c0_70 = arith.constant 0 : index
    %c0_71 = arith.constant 0 : index
    %112 = vector.load %arg19[%111, %c0_70, %c0_71] : memref<4x8x32xf32, #tpu.memory_space<vmem>>, vector<1x8x32xf32>
    %113 = vector.shape_cast %112 : vector<1x8x32xf32> to vector<8x32xf32>
    %114 = arith.mulf %101, %92 : vector<8x32xf32>
    %115 = arith.addf %113, %114 : vector<8x32xf32>
    %116 = math.tanh %115 : vector<8x32xf32>
    %cst_72 = arith.constant 1.000000e+00 : f32
    %117 = vector.broadcast %cst_72 : f32 to vector<8x32xf32>
    %118 = arith.subf %117, %110 : vector<8x32xf32>
    %119 = arith.mulf %118, %116 : vector<8x32xf32>
    %120 = arith.mulf %110, %88 : vector<8x32xf32>
    %121 = arith.addf %119, %120 : vector<8x32xf32>
    %122 = arith.addi %42, %c1_i32 : i32
    %123 = vector.broadcast %122 : i32 to vector<8x32xi32>
    %124 = arith.cmpi sgt, %41, %123 : vector<8x32xi32>
    %cst_73 = arith.constant 0.000000e+00 : f32
    %125 = vector.broadcast %cst_73 : f32 to vector<8x32xf32>
    %126 = arith.select %124, %121, %125 : vector<8x32xi1>, vector<8x32xf32>
    %127 = arith.index_cast %c1_i32 : i32 to index
    %c0_74 = arith.constant 0 : index
    %c0_75 = arith.constant 0 : index
    %128 = vector.load %arg15[%127, %c0_74, %c0_75] : memref<4x8x32xf32, #tpu.memory_space<vmem>>, vector<1x8x32xf32>
    %129 = vector.shape_cast %128 : vector<1x8x32xf32> to vector<8x32xf32>
    %130 = vector.shape_cast %126 : vector<8x32xf32> to vector<1x8x32xf32>
    tpu.vector_store %arg15[%127, %c0_74, %c0_75], %130 {strides = array<i32>} : memref<4x8x32xf32, #tpu.memory_space<vmem>>, vector<1x8x32xf32>,
    %131 = arith.select %124, %121, %88 : vector<8x32xi1>, vector<8x32xf32>
    %c0_76 = arith.constant 0 : index
    %c0_77 = arith.constant 0 : index
    %132 = vector.load %arg20[%c0_76, %c0_77] : memref<8x32xf32, #tpu.memory_space<vmem>>, vector<8x32xf32>
    tpu.vector_store %arg20[%c0_76, %c0_77], %131 {strides = array<i32>} : memref<8x32xf32, #tpu.memory_space<vmem>>, vector<8x32xf32>,
    %c2_i32 = arith.constant 2 : i32
    %c0_78 = arith.constant 0 : index
    %c0_79 = arith.constant 0 : index
    %133 = vector.load %arg20[%c0_78, %c0_79] : memref<8x32xf32, #tpu.memory_space<vmem>>, vector<8x32xf32>
    %cst_80 = arith.constant dense<0.000000e+00> : vector<8x32xf32>
    %134 = tpu.matmul %133, %33, %cst_80 {dimension_numbers = #tpu.dot_dimension_numbers<[1], [0], [0], [1], [0, 0, 1, 1], [], []>} : vector<8x32xf32>, vector<32x32xf32>, vector<8x32xf32> -> vector<8x32xf32>
    %cst_81 = arith.constant dense<0.000000e+00> : vector<8x32xf32>
    %135 = tpu.matmul %133, %34, %cst_81 {dimension_numbers = #tpu.dot_dimension_numbers<[1], [0], [0], [1], [0, 0, 1, 1], [], []>} : vector<8x32xf32>, vector<32x32xf32>, vector<8x32xf32> -> vector<8x32xf32>
    %cst_82 = arith.constant dense<0.000000e+00> : vector<8x32xf32>
    %136 = tpu.matmul %133, %35, %cst_82 {dimension_numbers = #tpu.dot_dimension_numbers<[1], [0], [0], [1], [0, 0, 1, 1], [], []>} : vector<8x32xf32>, vector<32x32xf32>, vector<8x32xf32> -> vector<8x32xf32>
    %137 = arith.addf %136, %38 : vector<8x32xf32>
    %138 = arith.index_cast %c2_i32 : i32 to index
    %c0_83 = arith.constant 0 : index
    %c0_84 = arith.constant 0 : index
    %139 = vector.load %arg17[%138, %c0_83, %c0_84] : memref<4x8x32xf32, #tpu.memory_space<vmem>>, vector<1x8x32xf32>
    %140 = vector.shape_cast %139 : vector<1x8x32xf32> to vector<8x32xf32>
    %141 = arith.addf %140, %134 : vector<8x32xf32>
    %142 = arith.negf %141 : vector<8x32xf32>
    %143 = math.exp %142 : vector<8x32xf32>
    %cst_85 = arith.constant 1.000000e+00 : f32
    %144 = vector.broadcast %cst_85 : f32 to vector<8x32xf32>
    %145 = arith.addf %144, %143 : vector<8x32xf32>
    %146 = arith.divf %144, %145 : vector<8x32xf32>
    %147 = arith.index_cast %c2_i32 : i32 to index
    %c0_86 = arith.constant 0 : index
    %c0_87 = arith.constant 0 : index
    %148 = vector.load %arg18[%147, %c0_86, %c0_87] : memref<4x8x32xf32, #tpu.memory_space<vmem>>, vector<1x8x32xf32>
    %149 = vector.shape_cast %148 : vector<1x8x32xf32> to vector<8x32xf32>
    %150 = arith.addf %149, %135 : vector<8x32xf32>
    %151 = arith.negf %150 : vector<8x32xf32>
    %152 = math.exp %151 : vector<8x32xf32>
    %cst_88 = arith.constant 1.000000e+00 : f32
    %153 = vector.broadcast %cst_88 : f32 to vector<8x32xf32>
    %154 = arith.addf %153, %152 : vector<8x32xf32>
    %155 = arith.divf %153, %154 : vector<8x32xf32>
    %156 = arith.index_cast %c2_i32 : i32 to index
    %c0_89 = arith.constant 0 : index
    %c0_90 = arith.constant 0 : index
    %157 = vector.load %arg19[%156, %c0_89, %c0_90] : memref<4x8x32xf32, #tpu.memory_space<vmem>>, vector<1x8x32xf32>
    %158 = vector.shape_cast %157 : vector<1x8x32xf32> to vector<8x32xf32>
    %159 = arith.mulf %146, %137 : vector<8x32xf32>
    %160 = arith.addf %158, %159 : vector<8x32xf32>
    %161 = math.tanh %160 : vector<8x32xf32>
    %cst_91 = arith.constant 1.000000e+00 : f32
    %162 = vector.broadcast %cst_91 : f32 to vector<8x32xf32>
    %163 = arith.subf %162, %155 : vector<8x32xf32>
    %164 = arith.mulf %163, %161 : vector<8x32xf32>
    %165 = arith.mulf %155, %133 : vector<8x32xf32>
    %166 = arith.addf %164, %165 : vector<8x32xf32>
    %167 = arith.addi %42, %c2_i32 : i32
    %168 = vector.broadcast %167 : i32 to vector<8x32xi32>
    %169 = arith.cmpi sgt, %41, %168 : vector<8x32xi32>
    %cst_92 = arith.constant 0.000000e+00 : f32
    %170 = vector.broadcast %cst_92 : f32 to vector<8x32xf32>
    %171 = arith.select %169, %166, %170 : vector<8x32xi1>, vector<8x32xf32>
    %172 = arith.index_cast %c2_i32 : i32 to index
    %c0_93 = arith.constant 0 : index
    %c0_94 = arith.constant 0 : index
    %173 = vector.load %arg15[%172, %c0_93, %c0_94] : memref<4x8x32xf32, #tpu.memory_space<vmem>>, vector<1x8x32xf32>
    %174 = vector.shape_cast %173 : vector<1x8x32xf32> to vector<8x32xf32>
    %175 = vector.shape_cast %171 : vector<8x32xf32> to vector<1x8x32xf32>
    tpu.vector_store %arg15[%172, %c0_93, %c0_94], %175 {strides = array<i32>} : memref<4x8x32xf32, #tpu.memory_space<vmem>>, vector<1x8x32xf32>,
    %176 = arith.select %169, %166, %133 : vector<8x32xi1>, vector<8x32xf32>
    %c0_95 = arith.constant 0 : index
    %c0_96 = arith.constant 0 : index
    %177 = vector.load %arg20[%c0_95, %c0_96] : memref<8x32xf32, #tpu.memory_space<vmem>>, vector<8x32xf32>
    tpu.vector_store %arg20[%c0_95, %c0_96], %176 {strides = array<i32>} : memref<8x32xf32, #tpu.memory_space<vmem>>, vector<8x32xf32>,
    %c3_i32 = arith.constant 3 : i32
    %c0_97 = arith.constant 0 : index
    %c0_98 = arith.constant 0 : index
    %178 = vector.load %arg20[%c0_97, %c0_98] : memref<8x32xf32, #tpu.memory_space<vmem>>, vector<8x32xf32>
    %cst_99 = arith.constant dense<0.000000e+00> : vector<8x32xf32>
    %179 = tpu.matmul %178, %33, %cst_99 {dimension_numbers = #tpu.dot_dimension_numbers<[1], [0], [0], [1], [0, 0, 1, 1], [], []>} : vector<8x32xf32>, vector<32x32xf32>, vector<8x32xf32> -> vector<8x32xf32>
    %cst_100 = arith.constant dense<0.000000e+00> : vector<8x32xf32>
    %180 = tpu.matmul %178, %34, %cst_100 {dimension_numbers = #tpu.dot_dimension_numbers<[1], [0], [0], [1], [0, 0, 1, 1], [], []>} : vector<8x32xf32>, vector<32x32xf32>, vector<8x32xf32> -> vector<8x32xf32>
    %cst_101 = arith.constant dense<0.000000e+00> : vector<8x32xf32>
    %181 = tpu.matmul %178, %35, %cst_101 {dimension_numbers = #tpu.dot_dimension_numbers<[1], [0], [0], [1], [0, 0, 1, 1], [], []>} : vector<8x32xf32>, vector<32x32xf32>, vector<8x32xf32> -> vector<8x32xf32>
    %182 = arith.addf %181, %38 : vector<8x32xf32>
    %183 = arith.index_cast %c3_i32 : i32 to index
    %c0_102 = arith.constant 0 : index
    %c0_103 = arith.constant 0 : index
    %184 = vector.load %arg17[%183, %c0_102, %c0_103] : memref<4x8x32xf32, #tpu.memory_space<vmem>>, vector<1x8x32xf32>
    %185 = vector.shape_cast %184 : vector<1x8x32xf32> to vector<8x32xf32>
    %186 = arith.addf %185, %179 : vector<8x32xf32>
    %187 = arith.negf %186 : vector<8x32xf32>
    %188 = math.exp %187 : vector<8x32xf32>
    %cst_104 = arith.constant 1.000000e+00 : f32
    %189 = vector.broadcast %cst_104 : f32 to vector<8x32xf32>
    %190 = arith.addf %189, %188 : vector<8x32xf32>
    %191 = arith.divf %189, %190 : vector<8x32xf32>
    %192 = arith.index_cast %c3_i32 : i32 to index
    %c0_105 = arith.constant 0 : index
    %c0_106 = arith.constant 0 : index
    %193 = vector.load %arg18[%192, %c0_105, %c0_106] : memref<4x8x32xf32, #tpu.memory_space<vmem>>, vector<1x8x32xf32>
    %194 = vector.shape_cast %193 : vector<1x8x32xf32> to vector<8x32xf32>
    %195 = arith.addf %194, %180 : vector<8x32xf32>
    %196 = arith.negf %195 : vector<8x32xf32>
    %197 = math.exp %196 : vector<8x32xf32>
    %cst_107 = arith.constant 1.000000e+00 : f32
    %198 = vector.broadcast %cst_107 : f32 to vector<8x32xf32>
    %199 = arith.addf %198, %197 : vector<8x32xf32>
    %200 = arith.divf %198, %199 : vector<8x32xf32>
    %201 = arith.index_cast %c3_i32 : i32 to index
    %c0_108 = arith.constant 0 : index
    %c0_109 = arith.constant 0 : index
    %202 = vector.load %arg19[%201, %c0_108, %c0_109] : memref<4x8x32xf32, #tpu.memory_space<vmem>>, vector<1x8x32xf32>
    %203 = vector.shape_cast %202 : vector<1x8x32xf32> to vector<8x32xf32>
    %204 = arith.mulf %191, %182 : vector<8x32xf32>
    %205 = arith.addf %203, %204 : vector<8x32xf32>
    %206 = math.tanh %205 : vector<8x32xf32>
    %cst_110 = arith.constant 1.000000e+00 : f32
    %207 = vector.broadcast %cst_110 : f32 to vector<8x32xf32>
    %208 = arith.subf %207, %200 : vector<8x32xf32>
    %209 = arith.mulf %208, %206 : vector<8x32xf32>
    %210 = arith.mulf %200, %178 : vector<8x32xf32>
    %211 = arith.addf %209, %210 : vector<8x32xf32>
    %212 = arith.addi %42, %c3_i32 : i32
    %213 = vector.broadcast %212 : i32 to vector<8x32xi32>
    %214 = arith.cmpi sgt, %41, %213 : vector<8x32xi32>
    %cst_111 = arith.constant 0.000000e+00 : f32
    %215 = vector.broadcast %cst_111 : f32 to vector<8x32xf32>
    %216 = arith.select %214, %211, %215 : vector<8x32xi1>, vector<8x32xf32>
    %217 = arith.index_cast %c3_i32 : i32 to index
    %c0_112 = arith.constant 0 : index
    %c0_113 = arith.constant 0 : index
    %218 = vector.load %arg15[%217, %c0_112, %c0_113] : memref<4x8x32xf32, #tpu.memory_space<vmem>>, vector<1x8x32xf32>
    %219 = vector.shape_cast %218 : vector<1x8x32xf32> to vector<8x32xf32>
    %220 = vector.shape_cast %216 : vector<8x32xf32> to vector<1x8x32xf32>
    tpu.vector_store %arg15[%217, %c0_112, %c0_113], %220 {strides = array<i32>} : memref<4x8x32xf32, #tpu.memory_space<vmem>>, vector<1x8x32xf32>,
    %221 = arith.select %214, %211, %178 : vector<8x32xi1>, vector<8x32xf32>
    %c0_114 = arith.constant 0 : index
    %c0_115 = arith.constant 0 : index
    %222 = vector.load %arg20[%c0_114, %c0_115] : memref<8x32xf32, #tpu.memory_space<vmem>>, vector<8x32xf32>
    tpu.vector_store %arg20[%c0_114, %c0_115], %221 {strides = array<i32>} : memref<8x32xf32, #tpu.memory_space<vmem>>, vector<8x32xf32>,
    %c4_i32_116 = arith.constant 4 : i32
    %c0_117 = arith.constant 0 : index
    %c0_118 = arith.constant 0 : index
    %223 = vector.load %arg20[%c0_117, %c0_118] : memref<8x32xf32, #tpu.memory_space<vmem>>, vector<8x32xf32>
    %c0_119 = arith.constant 0 : index
    %c0_120 = arith.constant 0 : index
    %224 = vector.load %arg16[%c0_119, %c0_120] : memref<8x32xf32, #tpu.memory_space<vmem>>, vector<8x32xf32>
    tpu.vector_store %arg16[%c0_119, %c0_120], %223 {strides = array<i32>} : memref<8x32xf32, #tpu.memory_space<vmem>>, vector<8x32xf32>,
    return
  }
  func.func @transform_0(%arg0: i32, %arg1: i32) -> (i32, i32, i32) {
    %c0_i32 = arith.constant 0 : i32
    %c0_i32_0 = arith.constant 0 : i32
    return %arg1, %arg0, %c0_i32 : i32, i32, i32
  }
  func.func @transform_1(%arg0: i32, %arg1: i32) -> (i32, i32) {
    %c0_i32 = arith.constant 0 : i32
    %c0_i32_0 = arith.constant 0 : i32
    return %arg0, %c0_i32 : i32, i32
  }
  func.func @transform_2(%arg0: i32, %arg1: i32) -> (i32, i32) {
    %c0_i32 = arith.constant 0 : i32
    %c0_i32_0 = arith.constant 0 : i32
    %c0_i32_1 = arith.constant 0 : i32
    return %c0_i32, %c0_i32_0 : i32, i32
  }
  func.func @transform_3(%arg0: i32, %arg1: i32) -> (i32, i32) {
    %c0_i32 = arith.constant 0 : i32
    %c0_i32_0 = arith.constant 0 : i32
    %c0_i32_1 = arith.constant 0 : i32
    return %c0_i32, %c0_i32_0 : i32, i32
  }
  func.func @transform_4(%arg0: i32, %arg1: i32) -> (i32, i32) {
    %c0_i32 = arith.constant 0 : i32
    %c0_i32_0 = arith.constant 0 : i32
    %c0_i32_1 = arith.constant 0 : i32
    return %c0_i32, %c0_i32_0 : i32, i32
  }
  func.func @transform_5(%arg0: i32, %arg1: i32) -> (i32, i32) {
    %c0_i32 = arith.constant 0 : i32
    %c0_i32_0 = arith.constant 0 : i32
    %c0_i32_1 = arith.constant 0 : i32
    return %c0_i32, %c0_i32_0 : i32, i32
  }
  func.func @transform_6(%arg0: i32, %arg1: i32) -> (i32, i32) {
    %c0_i32 = arith.constant 0 : i32
    %c0_i32_0 = arith.constant 0 : i32
    %c0_i32_1 = arith.constant 0 : i32
    return %c0_i32, %c0_i32_0 : i32, i32
  }
  func.func @transform_7(%arg0: i32, %arg1: i32) -> (i32, i32) {
    %c0_i32 = arith.constant 0 : i32
    %c0_i32_0 = arith.constant 0 : i32
    %c0_i32_1 = arith.constant 0 : i32
    return %c0_i32, %c0_i32_0 : i32, i32
  }
  func.func @transform_8(%arg0: i32, %arg1: i32) -> (i32, i32) {
    %c0_i32 = arith.constant 0 : i32
    %c0_i32_0 = arith.constant 0 : i32
    %c0_i32_1 = arith.constant 0 : i32
    return %c0_i32, %c0_i32_0 : i32, i32
  }
  func.func @transform_9(%arg0: i32, %arg1: i32) -> (i32, i32) {
    %c0_i32 = arith.constant 0 : i32
    %c0_i32_0 = arith.constant 0 : i32
    %c0_i32_1 = arith.constant 0 : i32
    return %c0_i32, %c0_i32_0 : i32, i32
  }
  func.func @transform_10(%arg0: i32, %arg1: i32) -> (i32, i32) {
    %c0_i32 = arith.constant 0 : i32
    %c0_i32_0 = arith.constant 0 : i32
    %c0_i32_1 = arith.constant 0 : i32
    return %c0_i32, %c0_i32_0 : i32, i32
  }
  func.func @transform_11(%arg0: i32, %arg1: i32) -> (i32, i32) {
    %c0_i32 = arith.constant 0 : i32
    %c0_i32_0 = arith.constant 0 : i32
    %c0_i32_1 = arith.constant 0 : i32
    return %c0_i32, %c0_i32_0 : i32, i32
  }
  func.func @transform_12(%arg0: i32, %arg1: i32) -> (i32, i32) {
    %c0_i32 = arith.constant 0 : i32
    %c0_i32_0 = arith.constant 0 : i32
    %c0_i32_1 = arith.constant 0 : i32
    return %c0_i32, %c0_i32_0 : i32, i32
  }
  func.func @transform_13(%arg0: i32, %arg1: i32) -> (i32, i32, i32) {
    %c0_i32 = arith.constant 0 : i32
    %c0_i32_0 = arith.constant 0 : i32
    return %arg1, %arg0, %c0_i32 : i32, i32, i32
  }
  func.func @transform_14(%arg0: i32, %arg1: i32) -> (i32, i32) {
    %c0_i32 = arith.constant 0 : i32
    %c0_i32_0 = arith.constant 0 : i32
    return %arg0, %c0_i32 : i32, i32
  }
}

</mosaic_0001>

<bundles_post_ra>
// kernel: encoder_forward.1
= control target key start
LH: loop header
LB: loop body
LE: loop exit
PB: predicated region body
PF: predicated region fallthrough
CT: control target
= control target key end

     0   :  { %s2728_s29 = smov 0   ;;  %s2730_s30 = smov 0   ;;  %s3027_s0 = inlined_call_operand.vmem [shape: s32[8,8,1], index: 0, kind: input, shape index: {}]   ;;  %s3028_s1 = inlined_call_operand.vmem [shape: s32[8,1], index: 1, kind: input, shape index: {}]   ;;  %s3029_s2 = inlined_call_operand.vmem [shape: f32[16,32], index: 2, kind: input, shape index: {}]   ;;  %s3030_s3 = inlined_call_operand.vmem [shape: f32[32,32], index: 3, kind: input, shape index: {}]   ;;  %s3031_s4 = inlined_call_operand.vmem [shape: f32[32,32], index: 4, kind: input, shape index: {}]   ;;  %s3032_s5 = inlined_call_operand.vmem [shape: f32[32,32], index: 5, kind: input, shape index: {}]   ;;  %s3033_s6 = inlined_call_operand.vmem [shape: f32[32,32], index: 6, kind: input, shape index: {}]   ;;  %s3034_s7 = inlined_call_operand.vmem [shape: f32[32,32], index: 7, kind: input, shape index: {}]   ;;  %s3035_s8 = inlined_call_operand.vmem [shape: f32[32,32], index: 8, kind: input, shape index: {}]   ;;  %s3036_s9 = inlined_call_operand.vmem [shape: f32[1,32], index: 9, kind: input, shape index: {}]   ;;  %s3037_s10 = inlined_call_operand.vmem [shape: f32[1,32], index: 10, kind: input, shape index: {}]   ;;  %s3038_s11 = inlined_call_operand.vmem [shape: f32[1,32], index: 11, kind: input, shape index: {}]   ;;  %s3039_s12 = inlined_call_operand.vmem [shape: f32[1,32], index: 12, kind: input, shape index: {}]   ;;  %s3040_s13 = inlined_call_operand.vmem [shape: f32[8,8,32], index: 13, kind: output, shape index: {0}]   ;;  %s3041_s14 = inlined_call_operand.vmem [shape: f32[8,32], index: 14, kind: output, shape index: {1}]  }
   0x1   :  { %s2732_s15 = smov 0  }
   0x2 LB: > { %s34_s16 = sadd.s32 1, %s2642_s30  ;;  %p2122_p0 = scmp.ge.s32.totalorder %s2646_s15, 1  ;;  %s2646_s15 = sphi %s2732_s15, %s25_s15   ;;  %s2642_s30 = sphi %s2730_s30, %s3043_s30   ;;  %s2638_s29 = sphi %s2728_s29, %s3042_s29  }
   0x3   : > { %p35_p1 = scmp.ge.s32.totalorder %s34_s16, 2  ;;  %p444_p2 = scmp.lt.s32.totalorder %s2646_s15, 3 }
   0x5   : > { %s3045_s16 = smov (%p35_p1, %s34_s16), 0  ;;  %p445_p3 = pnand %p2122_p0, %p444_p2 }
   0x6   : > { %s2746_s17 = sshll.u32 (!%p445_p3), %s2638_s29, 2  ;;  %p2127_p5 = scmp.ne.s32.totalorder (!%p445_p3), %s2638_s29, 0 }
   0x7   : > { %448 = sbr.rel (%p445_p3) target bundleno = 1456 (0x5b0), region = 72  ;;  %p505_p4 = scmp.lt.s32.totalorder (!%p445_p3), %s2746_s17, 7 }
   0xe   : > { %s506_s18 = scalar_select %p505_p4, %s2746_s17, 7 }
   0xf   : > { %533 = sbr.rel (%p2127_p5) target bundleno = 22 (0x16), region = 76  ;;  %vm534_vm0 = vcmask (!%p2127_p5), 261120   ;;  %v2648_v0 = vmov (!%p2127_p5), 0.0  }
  0x10   : > { %s2124_s19 = sshll.u32 %s506_s18, 3  ;;  %535 = vst.msk [vmem:[#allocation5] sm:$0xff] (!%p2127_p5), %vm534_vm0, %v2648_v0 }
  0x11   : > { %s511_s22 = scalar_lea.vmem %s3027_s0, %s2124_s19  ;;  %s2756_s25 = scalar_lea.vmem %s3040_s13, %s2124_s19 }
  0x16 PF: > { %v536_v1 = vld [vmem:[%s511_s22] sm:$0xff]  ;;  %v538_v2 = vld [vmem:[%s511_s22 + $0x10] sm:$0xff]  ;;  %v2649_v3 = vmov 0   ;;  %v567_v5 = vld [vmem:[%s3029_s2 + $0x8] sm:$0xff]  ;;  %v540_v19 = vlaneseq  ;;  %vm568_vm1 = vcmask 130048   ;;  %v2650_v23 = vmov 0.0  }
  0x17   : > { %2582 = vset.pattern.permute.xlu0 %v2649_v3  ;;  %2583 = vset.pattern.permute.xlu1 %v2649_v3  ;;  %v566_v4 = vld [vmem:[%s3029_s2] sm:$0xff]  ;;  %v537_v6 = vld [vmem:[%s511_s22 + $0x8] sm:$0xff]  ;;  %v539_v7 = vld [vmem:[%s511_s22 + $0x18] sm:$0xff]  ;;  %v2651_v36 = vmov 0.0|0.0   ;;  %vm677_vm6 = vcmask 261120   ;;  %vm2652_vm7 = vmmov 0  }
  0x18   : > { %543 = vperm.xlu0 %2582, %v536_v1   ;;  %549 = vperm.xlu1 %2583, %v538_v2   ;;  %v2453_v8 = vpack.c.bf16 %v567_v5, %v566_v4  ;;  %v998_v9 = vld [vmem:[%s3028_s1] sm:$0xff]  ;;  %v667_v11 = vld [vmem:[%s3030_s3 + $0x8] sm:$0xff]  ;;  %v668_v15 = vld [vmem:[%s3030_s3 + $0x10] sm:$0xff]  ;;  %v541_v20 = vand.u32 127, %v540_v19  ;;  %s1488_s21 = sadd.s32 1, %s2746_s17  ;;  %s1737_s23 = sadd.s32 2, %s2746_s17 }
  0x19   : > { %v666_v10 = vld [vmem:[%s3030_s3] sm:$0xff]  ;;  %v780_v14 = vld [vmem:[%s3031_s4 + $0x8] sm:$0xff]  ;;  %v669_v16 = vld [vmem:[%s3030_s3 + $0x18] sm:$0xff]  ;;  %s1986_s24 = sadd.s32 3, %s2746_s17 }
  0x1a   : > { %2454 = vmatprep.subr.bf16.mxu0 %v2453_v8  ;;  %v779_v12 = vld [vmem:[%s3031_s4] sm:$0xff]  ;;  %v2457_v13 = vpack.c.bf16 %v667_v11, %v666_v10  ;;  %v2461_v18 = vpack.c.bf16 %v669_v16, %v668_v15  ;;  %v781_v25 = vld [vmem:[%s3031_s4 + $0x10] sm:$0xff]  ;;  %v782_v26 = vld [vmem:[%s3031_s4 + $0x18] sm:$0xff] }
  0x1b   : > { %2456 = vmatpush3.bf16.msra.mxu0 %v2453_v8  ;;  %v2465_v17 = vpack.c.bf16 %v780_v14, %v779_v12  ;;  %v2469_v30 = vpack.c.bf16 %v782_v26, %v781_v25  ;;  %v879_v33 = vld [vmem:[%s3032_s5] sm:$0xff]  ;;  %v880_v34 = vld [vmem:[%s3032_s5 + $0x8] sm:$0xff]  ;;  %v881_v39 = vld [vmem:[%s3032_s5 + $0x10] sm:$0xff] }
  0x1c   : > { %546 = vperm.xlu0 %2582, %v537_v6   ;;  %552 = vperm.xlu1 %2583, %v539_v7   ;;  %v2473_v35 = vpack.c.bf16 %v880_v34, %v879_v33  ;;  %v979_v37 = vld [vmem:[%s3033_s6] sm:$0xff]  ;;  %v980_v38 = vld [vmem:[%s3033_s6 + $0x8] sm:$0xff]  ;;  %v882_v40 = vld [vmem:[%s3032_s5 + $0x18] sm:$0xff] }
  0x1d   : > { %2458 = vmatprep.subr.bf16.mxu1 %v2457_v13  ;;  %2466 = vmatprep.subr.bf16.mxu0 %v2465_v17  ;;  %v2818_v42 = vpack.c.bf16 %v980_v38, %v979_v37  ;;  %v2477_v44 = vpack.c.bf16 %v882_v40, %v881_v39  ;;  %v981_v45 = vld [vmem:[%s3033_s6 + $0x10] sm:$0xff]  ;;  %v982_v46 = vld [vmem:[%s3033_s6 + $0x18] sm:$0xff]  ;;  %v983_v50 = vld [vmem:[%s3034_s7] sm:$0xff] }
  0x1e   : > { %2460 = vmatpush3.bf16.msra.mxu1 %v2457_v13  ;;  %v2832_v49 = vpack.c.bf16 %v982_v46, %v981_v45  ;;  %v984_v51 = vld [vmem:[%s3034_s7 + $0x8] sm:$0xff]  ;;  %v987_v52 = vld [vmem:[%s3035_s8] sm:$0xff]  ;;  %v985_v55 = vld [vmem:[%s3034_s7 + $0x10] sm:$0xff] }
  0x1f   : > { %2462 = vmatprep.subr.bf16.mxu1 %v2461_v18  ;;  %v988_v53 = vld [vmem:[%s3035_s8 + $0x8] sm:$0xff]  ;;  %v2851_v54 = vpack.c.bf16 %v984_v51, %v983_v50  ;;  %v986_v56 = vld [vmem:[%s3034_s7 + $0x18] sm:$0xff]  ;;  %v2863_v57 = vld [vmem:[#allocation5] sm:$0xff] }
  0x20   : > { %1000 = vperm.xlu0 %2582, %v998_v9   ;;  %v2866_v58 = vpack.c.bf16 %v988_v53, %v987_v52  ;;  %v989_v59 = vld [vmem:[%s3035_s8 + $0x10] sm:$0xff]  ;;  %v990_v60 = vld [vmem:[%s3035_s8 + $0x18] sm:$0xff]  ;;  %v2877_v61 = vpack.c.bf16 %v986_v56, %v985_v55  ;;  %v2136_v63 = vld [vmem:[%s3036_s9] ss:$0 sm:$0xff]  ;;  %v1241_v56 = vstv %s2746_s17 }
  0x21   : > { %v2883_v62 = vpack.c.bf16 %v990_v60, %v989_v59  ;;  %v2141_v0 = vld [vmem:[%s3037_s10] ss:$0 sm:$0xff] }
  0x22   : > { %2464 = vmatpush3.bf16.msra.mxu1 %v2461_v18 }
  0x23   : > { %2474 = vmatprep.subr.bf16.mxu1 %v2473_v35 }
  0x97   : > { %v544_v21 = vpop.permute.xlu0 %543  ;;  %v550_v22 = vpop.permute.xlu1 %549 }
  0x98   : > { %vm554_vm2 = vcmp.eq.s32.totalorder %v544_v21, %v541_v20  ;;  %vm556_vm3 = vcmp.eq.s32.totalorder %v550_v22, %v541_v20 }
  0x99   : > { %v2128_v24 = vsel %vm554_vm2, 1.0, %v2650_v23  ;;  %v2130_v29 = vsel %vm556_vm3, 1.0, %v2650_v23 }
  0x9a   : > { %2273 = vmatprep.mubr.msk.f32.mxu0 %vm568_vm1, %v2128_v24 }
  0x9b   : > { %v547_v27 = vpop.permute.xlu0 %546  ;;  %v553_v28 = vpop.permute.xlu1 %552 }
  0x9c   : > { %vm555_vm4 = vcmp.eq.s32.totalorder %v547_v27, %v541_v20  ;;  %vm557_vm5 = vcmp.eq.s32.totalorder %v553_v28, %v541_v20 }
  0x9d   : > { %v2129_v31 = vsel %vm555_vm4, 1.0, %v2650_v23  ;;  %v2131_v32 = vsel %vm557_vm5, 1.0, %v2650_v23 }
  0x9e   : > { %2274 = vmatmul.mubr.msk.f32.vlgmr.msra.gmra.mrb[0].mxu0 %vm568_vm1, %v2129_v31 }
  0x9f   : > { %2276 = vmatprep.mubr.msk.f32.mxu0 %vm568_vm1, %v2130_v29  ;;  %2468 = vmatpush3.bf16.msra.mxu0 %v2465_v17  ;;  %v2146_v17 = vld [vmem:[%s3038_s11] ss:$0 sm:$0xff]  ;;  %v2939_v59 = vpop.permute.xlu0 %1000 }
  0xa0   : > { %2470 = vmatprep.subr.bf16.mxu0 %v2469_v30  ;;  %vm1242_vm8 = vcmp.gt.s32.totalorder %v2939_v59, %v1241_v56 }
  0xa2   : > { %2277 = vmatmul.mubr.msk.f32.gmra.mrb[2].mxu0 %vm568_vm1, %v2131_v32 }
  0xa3   : > { %2472 = vmatpush3.bf16.msra.mxu0 %v2469_v30 }
  0xa4   : > { %2481 = vmatprep.subr.bf16.mxu0 %v2651_v36 }
 0x171   : > { %v2275_v41 = vpop.f32.mrb[0].mxu0 }
 0x172   : > { %v647_v43 = vpop.f32.mrb[1].mxu0 }
 0x173   : > { %2287 = vmatprep.mubr.msk.f32.mxu1 %vm677_vm6, %v647_v43  ;;  %2301 = vmatprep.mubr.msk.f32.mxu0 %vm677_vm6, %v647_v43 }
 0x174   : > { %2288 = vmatmul.mubr.msk.f32.vlgmr.msra.gmra.mrb[0].mxu1 %vm677_vm6, %v2275_v41  ;;  %2302 = vmatmul.mubr.msk.f32.vlgmr.msra.gmra.mrb[4].mxu0 %vm677_vm6, %v2275_v41 }
 0x175   : > { %v2278_v47 = vpop.f32.mrb[2].mxu0  ;;  %2476 = vmatpush3.bf16.msra.mxu1 %v2473_v35  ;;  %2483 = vmatpush3.bf16.msra.mxu0 %v2818_v42 }
 0x176   : > { %v657_v48 = vpop.f32.mrb[3].mxu0  ;;  %2478 = vmatprep.subr.bf16.mxu1 %v2477_v44  ;;  %2484 = vmatprep.subr.bf16.mxu0 %v2651_v36 }
 0x177   : > { %2290 = vmatprep.mubr.msk.f32.mxu1 %vm677_vm6, %v657_v48  ;;  %2304 = vmatprep.mubr.msk.f32.mxu0 %vm677_vm6, %v657_v48 }
 0x178   : > { %2291 = vmatmul.mubr.msk.f32.gmra.mrb[2].mxu1 %vm677_vm6, %v2278_v47  ;;  %2305 = vmatmul.mubr.msk.f32.gmra.mrb[6].mxu0 %vm677_vm6, %v2278_v47 }
 0x179   : > { %2480 = vmatpush3.bf16.msra.mxu1 %v2477_v44  ;;  %2315 = vmatprep.mubr.msk.f32.mxu1 %vm677_vm6, %v647_v43  ;;  %v2935_v44 = vld [vmem:[%s3039_s12] ss:$0 sm:$0xff] }
 0x17a   : > { %2486 = vmatpush3.bf16.msra.mxu0 %v2832_v49  ;;  %2487 = vmatprep.subr.bf16.mxu1 %v2651_v36 }
 0x17b   : > { %2329 = vmatprep.mubr.msk.f32.mxu0 %vm2652_vm7, %v2650_v23  ;;  %2493 = vmatprep.subr.bf16.mxu0 %v2651_v36 }
 0x17c   : > { %2316 = vmatmul.mubr.msk.f32.vlgmr.msra.gmra.mrb[4].mxu1 %vm677_vm6, %v2275_v41 }
 0x17d   : > { %2318 = vmatprep.mubr.msk.f32.mxu1 %vm677_vm6, %v657_v48  ;;  %2489 = vmatpush3.bf16.msra.mxu1 %v2851_v54 }
 0x17e   : > { %2330 = vmatmul.mubr.msk.f32.vlgmr.msra.gmra.mrb[8].mxu0 %vm677_vm6, %v2863_v57  ;;  %2490 = vmatprep.subr.bf16.mxu1 %v2651_v36 }
 0x17f   : > { %2495 = vmatpush3.bf16.msra.mxu0 %v2866_v58  ;;  %2351 = vmatprep.mubr.msk.f32.mxu0 %vm2652_vm7, %v2650_v23 }
 0x180   : > { %2319 = vmatmul.mubr.msk.f32.gmra.mrb[6].mxu1 %vm677_vm6, %v2278_v47  ;;  %2496 = vmatprep.subr.bf16.mxu0 %v2651_v36 }
 0x181   : > { %2492 = vmatpush3.bf16.msra.mxu1 %v2877_v61  ;;  %2340 = vmatprep.mubr.msk.f32.mxu1 %vm2652_vm7, %v2650_v23 }
 0x182   : > { %2499 = vmatprep.subr.bf16.mxu1 %v2651_v36 }
 0x183   : > { %2498 = vmatpush3.bf16.msra.mxu0 %v2883_v62 }
 0x184   : > { %2341 = vmatmul.mubr.msk.f32.vlgmr.msra.gmra.mrb[8].mxu1 %vm677_vm6, %v2863_v57  ;;  %2505 = vmatprep.subr.bf16.mxu0 %v2651_v36 }
 0x185   : > { %2501 = vmatpush3.bf16.msra.mxu1 %v2818_v42  ;;  %2362 = vmatprep.mubr.msk.f32.mxu1 %vm2652_vm7, %v2650_v23 }
 0x186   : > { %2352 = vmatmul.mubr.msk.f32.vlgmr.msra.gmra.mrb[10].mxu0 %vm677_vm6, %v2863_v57  ;;  %2502 = vmatprep.subr.bf16.mxu1 %v2651_v36 }
 0x187   : > { %2507 = vmatpush3.bf16.msra.mxu0 %v2851_v54  ;;  %2373 = vmatprep.mubr.msk.f32.mxu0 %vm2652_vm7, %v2650_v23 }
 0x188   : > { %2508 = vmatprep.subr.bf16.mxu0 %v2651_v36 }
 0x189   : > { %2504 = vmatpush3.bf16.msra.mxu1 %v2832_v49 }
 0x18a   : > { %2511 = vmatprep.subr.bf16.mxu1 %v2651_v36 }
 0x18b   : > { %2510 = vmatpush3.bf16.msra.mxu0 %v2877_v61 }
 0x18c   : > { %2517 = vmatprep.subr.bf16.mxu0 %v2651_v36 }
 0x247   : > { %v2289_v1 = vpop.f32.mrb[0].mxu1  ;;  %v2303_v2 = vpop.f32.mrb[4].mxu0 }
 0x248   : > { %v762_v3 = vadd.f32 %v2289_v1, %v2136_v63  ;;  %v862_v4 = vadd.f32 %v2303_v2, %v2141_v0  ;;  %v756_v5 = vpop.f32.mrb[1].mxu1  ;;  %v856_v6 = vpop.f32.mrb[5].mxu0 }
 0x249   : > { %v757_v7 = vadd.f32 %v2136_v63, %v756_v5  ;;  %v857_v8 = vadd.f32 %v2141_v0, %v856_v6 }
 0x24a   : > { %776 = vst.msk [vmem:[#allocation2 + $0x8] sm:$0xff] %vm677_vm6, %v762_v3  ;;  %876 = vst.msk [vmem:[#allocation3 + $0x8] sm:$0xff] %vm677_vm6, %v862_v4 }
 0x24b   : > { %775 = vst.msk [vmem:[#allocation2] sm:$0xff] %vm677_vm6, %v757_v7  ;;  %875 = vst.msk [vmem:[#allocation3] sm:$0xff] %vm677_vm6, %v857_v8  ;;  %v2292_v9 = vpop.f32.mrb[2].mxu1  ;;  %v2306_v10 = vpop.f32.mrb[6].mxu0 }
 0x24c   : > { %v772_v11 = vadd.f32 %v2292_v9, %v2136_v63  ;;  %v872_v12 = vadd.f32 %v2306_v10, %v2141_v0  ;;  %v766_v13 = vpop.f32.mrb[3].mxu1  ;;  %v866_v14 = vpop.f32.mrb[7].mxu0 }
 0x24d   : > { %v767_v15 = vadd.f32 %v2136_v63, %v766_v13  ;;  %v867_v16 = vadd.f32 %v2141_v0, %v866_v14 }
 0x24e   : > { %778 = vst.msk [vmem:[#allocation2 + $0x18] sm:$0xff] %vm677_vm6, %v772_v11  ;;  %878 = vst.msk [vmem:[#allocation3 + $0x18] sm:$0xff] %vm677_vm6, %v872_v12 }
 0x24f   : > { %777 = vst.msk [vmem:[#allocation2 + $0x10] sm:$0xff] %vm677_vm6, %v767_v15  ;;  %877 = vst.msk [vmem:[#allocation3 + $0x10] sm:$0xff] %vm677_vm6, %v867_v16  ;;  %v2317_v18 = vpop.f32.mrb[4].mxu1 }
 0x250   : > { %v962_v19 = vadd.f32 %v2317_v18, %v2146_v17  ;;  %v956_v20 = vpop.f32.mrb[5].mxu1 }
 0x251   : > { %v957_v21 = vadd.f32 %v2146_v17, %v956_v20  ;;  %v1073_v22 = vpop.f32.mrb[8].mxu0  ;;  %v1462_v4 = vld [vmem:[#allocation2 + $0x8] sm:$0xff] }
 0x252   : > { %976 = vst.msk [vmem:[#allocation4 + $0x8] sm:$0xff] %vm677_vm6, %v962_v19  ;;  %v1217_v24 = vld [vmem:[#allocation2] sm:$0xff]  ;;  %v2331_v25 = vpop.f32.mrb[9].mxu0  ;;  %v1471_v10 = vld [vmem:[#allocation3 + $0x8] sm:$0xff] }
 0x253   : > { %975 = vst.msk [vmem:[#allocation4] sm:$0xff] %vm677_vm6, %v957_v21  ;;  %v1218_v26 = vadd.f32 %v1217_v24, %v1073_v22  ;;  %v2320_v27 = vpop.f32.mrb[6].mxu1  ;;  %v1225_v33 = vld [vmem:[#allocation3] sm:$0xff] }
 0x254   : > { %v972_v28 = vadd.f32 %v2320_v27, %v2146_v17  ;;  %v966_v29 = vpop.f32.mrb[7].mxu1 }
 0x255   : > { %v2156_v30 = vmul.f32 -1.442695, %v1218_v26  ;;  %v967_v31 = vadd.f32 %v2146_v17, %v966_v29 }
 0x256   : > { %978 = vst.msk [vmem:[#allocation4 + $0x18] sm:$0xff] %vm677_vm6, %v972_v28  ;;  %v1489_v28 = vstv %s1488_s21 }
 0x257   : > { %2584 = vpow2.f32 %v2156_v30  ;;  %977 = vst.msk [vmem:[#allocation4 + $0x10] sm:$0xff] %vm677_vm6, %v967_v31  ;;  %v1143_v32 = vpop.f32.mrb[8].mxu1  ;;  %vm1490_vm9 = vcmp.gt.s32.totalorder %v2939_v59, %v1489_v28  ;;  %v1987_v28 = vstv %s1986_s24 }
 0x258   : > { %v1226_v34 = vadd.f32 %v1225_v33, %v1143_v32  ;;  %v2342_v35 = vpop.f32.mrb[9].mxu1  ;;  %vm1988_vm11 = vcmp.gt.s32.totalorder %v2939_v59, %v1987_v28 }
 0x259   : > { %v1213_v37 = vpop.f32.mrb[10].mxu0  ;;  %v1480_v22 = vld [vmem:[#allocation4 + $0x8] sm:$0xff]  ;;  %v1711_v35 = vld [vmem:[#allocation2 + $0x10] sm:$0xff] }
 0x25a   : > { %v2157_v38 = vmul.f32 -1.442695, %v1226_v34  ;;  %v2353_v39 = vpop.f32.mrb[11].mxu0  ;;  %v1214_v46 = vadd.f32 %v2935_v44, %v1213_v37  ;;  %v1233_v50 = vld [vmem:[#allocation4] sm:$0xff] }
 0x25c   : > { %2586 = vpow2.f32 %v2157_v38 }
 0x261   : > { %v2585_v40 = vpop.eup %2584 }
 0x262   : > { %v1222_v41 = vadd.f32 1.0, %v2585_v40 }
 0x264   : > { %2588 = vrcp.f32 %v1222_v41  ;;  %v1720_v41 = vld [vmem:[#allocation3 + $0x10] sm:$0xff] }
 0x266   : > { %v2587_v43 = vpop.eup %2586 }
 0x267   : > { %v1230_v45 = vadd.f32 1.0, %v2587_v43 }
 0x269   : > { %2590 = vrcp.f32 %v1230_v45 }
 0x26e   : > { %v2589_v47 = vpop.eup %2588 }
 0x26f   : > { %v1234_v48 = vmul.f32 %v2589_v47, %v1214_v46 }
 0x271   : > { %v1235_v51 = vadd.f32 %v1234_v48, %v1233_v50 }
 0x273   : > { %2592 = vtanh.f32 %v1235_v51  ;;  %v2591_v52 = vpop.eup %2590 }
 0x274   : > { %v1237_v53 = vsub.f32 1.0, %v2591_v52  ;;  %v1239_v60 = vmul.f32 %v2591_v52, %v2863_v57 }
 0x27d   : > { %v2593_v55 = vpop.eup %2592 }
 0x27e   : > { %v1238_v63 = vmul.f32 %v2593_v55, %v1237_v53  ;;  %v1729_v55 = vld [vmem:[#allocation4 + $0x10] sm:$0xff] }
 0x280   : > { %v1240_v0 = vadd.f32 %v1239_v60, %v1238_v63 }
 0x282   : > { %v1243_v1 = vsel %vm1242_vm8, %v1240_v0, 0.0  ;;  %v1245_v2 = vsel %vm1242_vm8, %v1240_v0, %v2863_v57 }
 0x283   : > { %1244 = vst.msk [vmem:[%s2756_s25] sm:$0xff] %vm677_vm6, %v1243_v1  ;;  %1246 = vst.msk [vmem:[#allocation5] sm:$0xff] %vm677_vm6, %v1245_v2  ;;  %v1738_v1 = vstv %s1737_s23 }
 0x284   : > { %vm1739_vm10 = vcmp.gt.s32.totalorder %v2939_v59, %v1738_v1 }
 0x28a   : > { %v1247_v3 = vld [vmem:[#allocation5] sm:$0xff] }
 0x28b   : > { %2363 = vmatmul.mubr.msk.f32.vlgmr.msra.gmra.mrb[10].mxu1 %vm677_vm6, %v1247_v3  ;;  %2374 = vmatmul.mubr.msk.f32.vlgmr.msra.gmra.mrb[12].mxu0 %vm677_vm6, %v1247_v3 }
 0x28c   : > { %2513 = vmatpush3.bf16.msra.mxu1 %v2866_v58  ;;  %2384 = vmatprep.mubr.msk.f32.mxu1 %vm2652_vm7, %v2650_v23 }
 0x28d   : > { %2514 = vmatprep.subr.bf16.mxu1 %v2651_v36  ;;  %2519 = vmatpush3.bf16.msra.mxu0 %v2818_v42 }
 0x28e   : > { %2520 = vmatprep.subr.bf16.mxu0 %v2651_v36  ;;  %2395 = vmatprep.mubr.msk.f32.mxu0 %vm2652_vm7, %v2650_v23 }
 0x290   : > { %2516 = vmatpush3.bf16.msra.mxu1 %v2883_v62 }
 0x291   : > { %2523 = vmatprep.subr.bf16.mxu1 %v2651_v36  ;;  %2522 = vmatpush3.bf16.msra.mxu0 %v2832_v49 }
 0x292   : > { %2529 = vmatprep.subr.bf16.mxu0 %v2651_v36 }
 0x293   : > { %2385 = vmatmul.mubr.msk.f32.vlgmr.msra.gmra.mrb[12].mxu1 %vm677_vm6, %v1247_v3 }
 0x294   : > { %2525 = vmatpush3.bf16.msra.mxu1 %v2851_v54  ;;  %2406 = vmatprep.mubr.msk.f32.mxu1 %vm2652_vm7, %v2650_v23 }
 0x295   : > { %2526 = vmatprep.subr.bf16.mxu1 %v2651_v36 }
 0x298   : > { %2528 = vmatpush3.bf16.msra.mxu1 %v2877_v61 }
 0x299   : > { %2535 = vmatprep.subr.bf16.mxu1 %v2651_v36 }
 0x35e   : > { %v1317_v57 = vpop.f32.mrb[10].mxu1  ;;  %v1387_v5 = vpop.f32.mrb[12].mxu0 }
 0x35f   : > { %v1463_v6 = vadd.f32 %v1462_v4, %v1317_v57  ;;  %v2364_v7 = vpop.f32.mrb[11].mxu1  ;;  %v2375_v8 = vpop.f32.mrb[13].mxu0  ;;  %v1472_v11 = vadd.f32 %v1471_v10, %v1387_v5 }
 0x360   : > { %v1960_v8 = vld [vmem:[#allocation2 + $0x18] sm:$0xff] }
 0x361   : > { %v2161_v9 = vmul.f32 -1.442695, %v1463_v6  ;;  %v2162_v12 = vmul.f32 -1.442695, %v1472_v11 }
 0x363   : > { %2594 = vpow2.f32 %v2161_v9 }
 0x364   : > { %2596 = vpow2.f32 %v2162_v12 }
 0x366   : > { %v1457_v13 = vpop.f32.mrb[12].mxu1 }
 0x367   : > { %v2386_v14 = vpop.f32.mrb[13].mxu1  ;;  %v1458_v19 = vadd.f32 %v2935_v44, %v1457_v13 }
 0x368   : > { %v1969_v14 = vld [vmem:[#allocation3 + $0x18] sm:$0xff] }
 0x36d   : > { %v2595_v15 = vpop.eup %2594 }
 0x36e   : > { %v1467_v16 = vadd.f32 1.0, %v2595_v15  ;;  %v2597_v17 = vpop.eup %2596 }
 0x36f   : > { %v1476_v18 = vadd.f32 1.0, %v2597_v17 }
 0x370   : > { %2598 = vrcp.f32 %v1467_v16 }
 0x371   : > { %2600 = vrcp.f32 %v1476_v18 }
 0x37a   : > { %v2599_v20 = vpop.eup %2598 }
 0x37b   : > { %v1481_v21 = vmul.f32 %v2599_v20, %v1458_v19  ;;  %v2601_v25 = vpop.eup %2600 }
 0x37c   : > { %v1484_v26 = vsub.f32 1.0, %v2601_v25  ;;  %v1486_v29 = vmul.f32 %v2601_v25, %v1247_v3 }
 0x37d   : > { %v1482_v24 = vadd.f32 %v1481_v21, %v1480_v22  ;;  %v1978_v22 = vld [vmem:[#allocation4 + $0x18] sm:$0xff] }
 0x37f   : > { %2602 = vtanh.f32 %v1482_v24 }
 0x389   : > { %v2603_v27 = vpop.eup %2602 }
 0x38a   : > { %v1485_v30 = vmul.f32 %v2603_v27, %v1484_v26 }
 0x38c   : > { %v1487_v31 = vadd.f32 %v1486_v29, %v1485_v30 }
 0x38e   : > { %v1491_v32 = vsel %vm1490_vm9, %v1487_v31, 0.0  ;;  %v1494_v33 = vsel %vm1490_vm9, %v1487_v31, %v1247_v3 }
 0x38f   : > { %2163 = vst.msk [vmem:[%s2756_s25 + $0x8] sm:$0xff] %vm677_vm6, %v1491_v32  ;;  %1495 = vst.msk [vmem:[#allocation5] sm:$0xff] %vm677_vm6, %v1494_v33 }
 0x396   : > { %v1496_v34 = vld [vmem:[#allocation5] sm:$0xff] }
 0x397   : > { %2396 = vmatmul.mubr.msk.f32.vlgmr.msra.gmra.mrb[14].mxu0 %vm677_vm6, %v1496_v34  ;;  %2407 = vmatmul.mubr.msk.f32.vlgmr.msra.gmra.mrb[14].mxu1 %vm677_vm6, %v1496_v34 }
 0x398   : > { %2531 = vmatpush3.bf16.msra.mxu0 %v2866_v58  ;;  %2417 = vmatprep.mubr.msk.f32.mxu0 %vm2652_vm7, %v2650_v23 }
 0x399   : > { %2532 = vmatprep.subr.bf16.mxu0 %v2651_v36  ;;  %2537 = vmatpush3.bf16.msra.mxu1 %v2818_v42 }
 0x39a   : > { %2538 = vmatprep.subr.bf16.mxu1 %v2651_v36  ;;  %2428 = vmatprep.mubr.msk.f32.mxu1 %vm2652_vm7, %v2650_v23 }
 0x39c   : > { %2534 = vmatpush3.bf16.msra.mxu0 %v2883_v62 }
 0x39d   : > { %2541 = vmatprep.subr.bf16.mxu0 %v2651_v36  ;;  %2540 = vmatpush3.bf16.msra.mxu1 %v2832_v49 }
 0x39e   : > { %2547 = vmatprep.subr.bf16.mxu1 %v2651_v36 }
 0x39f   : > { %2418 = vmatmul.mubr.msk.f32.vlgmr.msra.gmra.mrb[16].mxu0 %vm677_vm6, %v1496_v34 }
 0x3a0   : > { %2543 = vmatpush3.bf16.msra.mxu0 %v2851_v54  ;;  %2439 = vmatprep.mubr.msk.f32.mxu0 %vm2652_vm7, %v2650_v23 }
 0x3a1   : > { %2544 = vmatprep.subr.bf16.mxu0 %v2651_v36 }
 0x3a4   : > { %2546 = vmatpush3.bf16.msra.mxu0 %v2877_v61 }
 0x46a   : > { %v1566_v42 = vpop.f32.mrb[14].mxu0  ;;  %v1636_v37 = vpop.f32.mrb[14].mxu1 }
 0x46b   : > { %v1712_v38 = vadd.f32 %v1711_v35, %v1566_v42  ;;  %v2397_v39 = vpop.f32.mrb[15].mxu0  ;;  %v2408_v40 = vpop.f32.mrb[15].mxu1  ;;  %v1721_v43 = vadd.f32 %v1720_v41, %v1636_v37 }
 0x46d   : > { %v2167_v49 = vmul.f32 -1.442695, %v1712_v38  ;;  %v2168_v45 = vmul.f32 -1.442695, %v1721_v43 }
 0x46f   : > { %2604 = vpow2.f32 %v2167_v49 }
 0x470   : > { %2606 = vpow2.f32 %v2168_v45 }
 0x472   : > { %v1706_v46 = vpop.f32.mrb[16].mxu0 }
 0x473   : > { %v2419_v54 = vpop.f32.mrb[17].mxu0  ;;  %v1707_v51 = vadd.f32 %v2935_v44, %v1706_v46 }
 0x479   : > { %v2605_v47 = vpop.eup %2604 }
 0x47a   : > { %v1716_v48 = vadd.f32 1.0, %v2605_v47  ;;  %v2607_v50 = vpop.eup %2606 }
 0x47b   : > { %v1725_v61 = vadd.f32 1.0, %v2607_v50 }
 0x47c   : > { %2608 = vrcp.f32 %v1716_v48 }
 0x47d   : > { %2610 = vrcp.f32 %v1725_v61 }
 0x486   : > { %v2609_v52 = vpop.eup %2608 }
 0x487   : > { %v1730_v53 = vmul.f32 %v2609_v52, %v1707_v51  ;;  %v2611_v60 = vpop.eup %2610 }
 0x488   : > { %v1733_v63 = vsub.f32 1.0, %v2611_v60  ;;  %v1735_v2 = vmul.f32 %v2611_v60, %v1496_v34 }
 0x489   : > { %v1731_v56 = vadd.f32 %v1730_v53, %v1729_v55 }
 0x48b   : > { %2612 = vtanh.f32 %v1731_v56 }
 0x495   : > { %v2613_v0 = vpop.eup %2612 }
 0x496   : > { %v1734_v3 = vmul.f32 %v2613_v0, %v1733_v63 }
 0x498   : > { %v1736_v57 = vadd.f32 %v1735_v2, %v1734_v3 }
 0x49a   : > { %v1740_v4 = vsel %vm1739_vm10, %v1736_v57, 0.0  ;;  %v1743_v5 = vsel %vm1739_vm10, %v1736_v57, %v1496_v34 }
 0x49b   : > { %2169 = vst.msk [vmem:[%s2756_s25 + $0x10] sm:$0xff] %vm677_vm6, %v1740_v4  ;;  %1744 = vst.msk [vmem:[#allocation5] sm:$0xff] %vm677_vm6, %v1743_v5 }
 0x4a2   : > { %v1745_v6 = vld [vmem:[#allocation5] sm:$0xff] }
 0x4a3   : > { %2429 = vmatmul.mubr.msk.f32.vlgmr.msra.gmra.mrb[16].mxu1 %vm677_vm6, %v1745_v6  ;;  %2440 = vmatmul.mubr.msk.f32.vlgmr.msra.gmra.mrb[18].mxu0 %vm677_vm6, %v1745_v6 }
 0x4a4   : > { %2549 = vmatpush3.bf16.msra.mxu1 %v2866_v58  ;;  %2450 = vmatprep.mubr.msk.f32.mxu1 %vm2652_vm7, %v2650_v23 }
 0x4a5   : > { %2550 = vmatprep.subr.bf16.mxu1 %v2651_v36 }
 0x4a8   : > { %2552 = vmatpush3.bf16.msra.mxu1 %v2883_v62 }
 0x4ab   : > { %2451 = vmatmul.mubr.msk.f32.vlgmr.msra.gmra.mrb[18].mxu1 %vm677_vm6, %v1745_v6 }
 0x576   : > { %v1815_v7 = vpop.f32.mrb[16].mxu1  ;;  %v1885_v9 = vpop.f32.mrb[18].mxu0 }
 0x577   : > { %v1961_v10 = vadd.f32 %v1960_v8, %v1815_v7  ;;  %v2430_v11 = vpop.f32.mrb[17].mxu1  ;;  %v2441_v12 = vpop.f32.mrb[19].mxu0  ;;  %v1970_v15 = vadd.f32 %v1969_v14, %v1885_v9 }
 0x579   : > { %v2173_v13 = vmul.f32 -1.442695, %v1961_v10  ;;  %v2174_v58 = vmul.f32 -1.442695, %v1970_v15 }
 0x57b   : > { %2614 = vpow2.f32 %v2173_v13 }
 0x57c   : > { %2616 = vpow2.f32 %v2174_v58 }
 0x57e   : > { %v1955_v16 = vpop.f32.mrb[18].mxu1 }
 0x57f   : > { %v2452_v23 = vpop.f32.mrb[19].mxu1  ;;  %v1956_v19 = vadd.f32 %v2935_v44, %v1955_v16 }
 0x585   : > { %v2615_v36 = vpop.eup %2614 }
 0x586   : > { %v1965_v17 = vadd.f32 1.0, %v2615_v36  ;;  %v2617_v62 = vpop.eup %2616 }
 0x587   : > { %v1974_v18 = vadd.f32 1.0, %v2617_v62 }
 0x588   : > { %2618 = vrcp.f32 %v1965_v17 }
 0x589   : > { %2620 = vrcp.f32 %v1974_v18 }
 0x592   : > { %v2619_v20 = vpop.eup %2618 }
 0x593   : > { %v1979_v21 = vmul.f32 %v2619_v20, %v1956_v19  ;;  %v2621_v25 = vpop.eup %2620 }
 0x594   : > { %v1982_v26 = vsub.f32 1.0, %v2621_v25  ;;  %v1984_v29 = vmul.f32 %v2621_v25, %v1745_v6 }
 0x595   : > { %v1980_v24 = vadd.f32 %v1979_v21, %v1978_v22 }
 0x597   : > { %2622 = vtanh.f32 %v1980_v24 }
 0x5a1   : > { %v2623_v27 = vpop.eup %2622 }
 0x5a2   : > { %v1983_v30 = vmul.f32 %v2623_v27, %v1982_v26 }
 0x5a4   : > { %v1985_v31 = vadd.f32 %v1984_v29, %v1983_v30 }
 0x5a6   : > { %v1989_v32 = vsel %vm1988_vm11, %v1985_v31, 0.0  ;;  %v1992_v33 = vsel %vm1988_vm11, %v1985_v31, %v1745_v6 }
 0x5a7   : > { %2175 = vst.msk [vmem:[%s2756_s25 + $0x18] sm:$0xff] %vm677_vm6, %v1989_v32  ;;  %1993 = vst.msk [vmem:[#allocation5] sm:$0xff] %vm677_vm6, %v1992_v33 }
 0x5ae   : > { %v1994_v44 = vld [vmem:[#allocation5] sm:$0xff] }
 0x5af   : > { %1995 = vst.msk [vmem:[%s3041_s14] sm:$0xff] %vm677_vm6, %v1994_v44 }
 0x5b0 PF: > { %s25_s15 = sadd.s32 1, %s2646_s15   ;;  %s3042_s29 = smov %s2642_s30 }
 0x5b1   : > { %p22_p6 = scmp.ge.s32.totalorder %s25_s15, 4   ;;  %s3043_s30 = smov %s3045_s16 }
 0x5b3   :  { %24 = sbr.rel (!%p22_p6) target bundleno = 2 (0x2), region = 133 }

</bundles_post_ra>
